<compile_context>
chip_gen: v7x
topology: tpu7x:2x2x1
jax: 0.10.0
libtpu: 0.0.40
codegen_flags: <defaults>
</compile_context>

<pallas_src>
import jax
import jax.numpy as jnp
from jax.experimental import pallas as pl
from jax.experimental.pallas import tpu as pltpu


_DEFAULT_BYPASS_BYTES = 1 << 20      # < 1 MiB: skip Pallas, just return x
_CHUNK_THRESHOLD_BYTES = 8 << 20     # >= 8 MiB: split into a few outstanding DMAs
_MAX_DMA_CHUNKS = 4


def _make_dma_copy_kernel(num_chunks, chunk_rows, last_rows):
    """Build an HBM->HBM copy kernel.

    num_chunks == 1 : one whole-buffer DMA (works for any rank, incl. 0-d).
    num_chunks  > 1 : slice the leading dim into `num_chunks` static chunks,
                      start every DMA, then wait on all of them so the copies
                      are concurrently outstanding.
    All arguments are Python ints, so the branch below is resolved at trace
    time (no in-kernel control flow).
    """

    def kernel(x_hbm, o_hbm, sems):
        if num_chunks == 1:
            cp = pltpu.make_async_copy(x_hbm, o_hbm, sems.at[0])
            cp.start()
            cp.wait()
        else:
            copies = []
            for c in range(num_chunks):
                rows = last_rows if c == num_chunks - 1 else chunk_rows
                start = c * chunk_rows
                copies.append(
                    pltpu.make_async_copy(
                        x_hbm.at[pl.ds(start, rows)],
                        o_hbm.at[pl.ds(start, rows)],
                        sems.at[c],
                    )
                )
            for cp in copies:
                cp.start()
            for cp in copies:
                cp.wait()

    return kernel


def _pallas_copy(x):
    """Materialized copy of `x` via direct HBM->HBM DMA (no VMEM staging)."""
    itemsize = jnp.dtype(x.dtype).itemsize
    nbytes = x.size * itemsize
    lead = x.shape[0] if x.ndim >= 1 else 1

    if x.ndim >= 1 and lead >= 2 and nbytes >= _CHUNK_THRESHOLD_BYTES:
        chunk_rows = pl.cdiv(lead, _MAX_DMA_CHUNKS)
        num_chunks = pl.cdiv(lead, chunk_rows)
        last_rows = lead - (num_chunks - 1) * chunk_rows
    else:
        num_chunks, chunk_rows, last_rows = 1, lead, lead

    kernel = _make_dma_copy_kernel(num_chunks, chunk_rows, last_rows)

    return pl.pallas_call(
        kernel,
        out_shape=jax.ShapeDtypeStruct(x.shape, x.dtype),
        in_specs=[pl.BlockSpec(memory_space=pl.ANY)],
        out_specs=pl.BlockSpec(memory_space=pl.ANY),
        scratch_shapes=[pltpu.SemaphoreType.DMA((num_chunks,))],
        cost_estimate=pl.CostEstimate(
            flops=0, transcendentals=0, bytes_accessed=2 * nbytes
        ),
    )(x)


def identity(x, *, materialize=True, min_pallas_bytes=_DEFAULT_BYPASS_BYTES):
    """Pallas nn.Identity.

    materialize=False (or any input below `min_pallas_bytes`) reproduces
    PyTorch semantics exactly: return the input, no copy, zero cost.
    materialize=True on a large enough input returns a fresh, non-aliased
    buffer produced by a single HBM->HBM DMA copy kernel.
    """
    if not materialize:
        return x

    nbytes = x.size * jnp.dtype(x.dtype).itemsize
    if x.size == 0 or nbytes < min_pallas_bytes:
        # Tiny tensors: launch cost dominates; `return x` IS nn.Identity.
        return x

    return _pallas_copy(x)


if __name__ == "__main__":
    key = jax.random.PRNGKey(0)

    # NCHW input, small shape: batch=2, channels=4, H=W=16 (8 KiB).
    x = jax.random.normal(key, (2, 4, 16, 16), dtype=jnp.float32)

    # Force the Pallas DMA path even for this tiny example so the kernel runs.
    y = identity(x, min_pallas_bytes=0)
    jax.block_until_ready(y)
    assert y.shape == x.shape and y.dtype == x.dtype
    assert jnp.array_equal(y, x)

    # Default path for small tensors: bypass (exact nn.Identity semantics).
    assert identity(x) is x
    assert identity(x, materialize=False) is x

    # Large input exercises the chunked multi-DMA path (8 MiB -> 4 DMAs).
    xl = jax.random.normal(key, (512, 4, 32, 32), dtype=jnp.float32)
    yl = identity(xl, min_pallas_bytes=0)
    jax.block_until_ready(yl)
    assert jnp.array_equal(yl, xl)

    print("KERNEL_OK")
</pallas_src>

<mosaic_0001>
module attributes {stable_mosaic.version = 11 : i64} {
  func.func @kernel(%arg0: memref<2x4x16x16xf32, #tpu.memory_space<any>>, %arg1: memref<2x4x16x16xf32, #tpu.memory_space<any>>, %arg2: memref<1x!tpu.dma_semaphore, #tpu.memory_space<semaphore_mem>>) attributes {dimension_semantics = [], scalar_prefetch = 0 : i64, scratch_operands = 1 : i64, tpu.core_type = #tpu.core_type<tc>} {
    %c0_i32 = arith.constant 0 : i32
    %0 = tpu.memref_slice %arg2[%c0_i32] : memref<1x!tpu.dma_semaphore, #tpu.memory_space<semaphore_mem>> -> memref<1x!tpu.dma_semaphore, #tpu.memory_space<semaphore_mem>>
    %1 = tpu.memref_squeeze %0 : memref<1x!tpu.dma_semaphore, #tpu.memory_space<semaphore_mem>> -> memref<!tpu.dma_semaphore, #tpu.memory_space<semaphore_mem>>
    tpu.enqueue_dma source(%arg0 : memref<2x4x16x16xf32, #tpu.memory_space<any>>) target(%arg1 : memref<2x4x16x16xf32, #tpu.memory_space<any>>) target_semaphore(%1 : memref<!tpu.dma_semaphore, #tpu.memory_space<semaphore_mem>>)
    %c0_i32_0 = arith.constant 0 : i32
    %2 = tpu.memref_slice %arg2[%c0_i32_0] : memref<1x!tpu.dma_semaphore, #tpu.memory_space<semaphore_mem>> -> memref<1x!tpu.dma_semaphore, #tpu.memory_space<semaphore_mem>>
    %3 = tpu.memref_squeeze %2 : memref<1x!tpu.dma_semaphore, #tpu.memory_space<semaphore_mem>> -> memref<!tpu.dma_semaphore, #tpu.memory_space<semaphore_mem>>
    tpu.wait_dma2 semaphore(%3 : memref<!tpu.dma_semaphore, #tpu.memory_space<semaphore_mem>>) src(%arg0 : memref<2x4x16x16xf32, #tpu.memory_space<any>>) dst(%arg1 : memref<2x4x16x16xf32, #tpu.memory_space<any>>)
    return
  }
}

</mosaic_0001>

<bundles_post_ra>
// kernel: tpu_custom_call.1
= control target key start
LH: loop header
LB: loop body
LE: loop exit
PB: predicated region body
PF: predicated region fallthrough
CT: control target
= control target key end

     0   :  { %s36_s6 = smov [#allocation2]   ;;  %s37_s7 = smov [#allocation3]   ;;  %s55_s0 = inlined_call_operand.hbm [shape: f32[2,4,16,16], index: 0, kind: input, shape index: {}]   ;;  %s56_s1 = inlined_call_operand.hbm [shape: f32[2,4,16,16], index: 1, kind: output, shape index: {}]  }
   0x1   :  { %s38_s8 = smov 0  }
   0x2   :  { %18 = dma.general %s55_s0, 2048, %s56_s1, %s36_s6, %s37_s7, [#allocation4], %s38_s8, 0  }
   0x3   :  { %34 = dma.done.wait [#allocation2], 2048 }
   0x4   :  { %35 = vsyncadd [#allocation2], 4294965248 }
   0x5   :  { %24 = vsyncmov [#allocation2] }
   0x8   :  { %s25_s13 = vpop.sfrf %24 }
   0x9   :  { %p30_p0 = scmp.ne.s32.totalorder %s25_s13, 0 }
   0xb   :  { %29 = shalt.err (%p30_p0)  }

</bundles_post_ra>
